<compile_context>
chip_gen: v7x
topology: tpu7x:2x2x1
jax: 0.10.0
libtpu: 0.0.40
codegen_flags: <defaults>
</compile_context>

<pallas_src>
import jax
import jax.numpy as jnp
from jax.experimental import pallas as pl
from jax.experimental.pallas import tpu as pltpu

EPS = 1e-5
VMEM_LIMIT = 32 * 1024 * 1024


# ----------------------------------------------------------------------------
# In-kernel helpers
# ----------------------------------------------------------------------------
def _upsample2x_nn(a):
    """Nearest-neighbour 2x spatial upsample of an (H, W, C) array.

    Built only from lane-preserving broadcasts/reshapes (C stays on the lane
    axis throughout); runs entirely in VMEM/vregs.
    """
    H, W, C = a.shape
    a = jnp.broadcast_to(a[:, None, :, :], (H, 2, W, C)).reshape(2 * H, W, C)
    a = jnp.broadcast_to(a[:, :, None, :], (2 * H, W, 2, C)).reshape(2 * H, 2 * W, C)
    return a


def _zero_border(pad_ref, H2, W2, Cin):
    """Zero only the 1-pixel border of the (H2+2, W2+2, Cin) pad buffer."""
    zr = jnp.zeros((1, W2 + 2, Cin), jnp.float32)
    zc = jnp.zeros((H2 + 2, 1, Cin), jnp.float32)
    pad_ref[0:1, :, :] = zr
    pad_ref[H2 + 1:H2 + 2, :, :] = zr
    pad_ref[:, 0:1, :] = zc
    pad_ref[:, W2 + 1:W2 + 2, :] = zc


def _im2col_3x3(pad_ref, patch_ref, H2, W2, Cin):
    """Gather the 9 shifted 3x3 taps into one (H2, W2, 9*Cin) patch buffer."""
    for tap in range(9):
        dy, dx = divmod(tap, 3)
        patch_ref[:, :, tap * Cin:(tap + 1) * Cin] = \
            pad_ref[dy:dy + H2, dx:dx + W2, :]


# ----------------------------------------------------------------------------
# Stage A: everything that can run at the ORIGINAL (pre-upsample) resolution.
# ----------------------------------------------------------------------------
def prep_kernel(x_ref, feat_ref, w3_ref, b3_ref, fcw_ref, fcb_ref,
                h_ref, skip_ref, aff2_ref):
    N, H, W, Cin = x_ref.shape
    M = N * H * W

    x = x_ref[...].reshape(M, Cin)
    feat = feat_ref[...]

    # one matmul for all four conditional-norm linears: [wv1 | bv1 | wv2 | bv2]
    aff = jnp.dot(feat, fcw_ref[...],
                  preferred_element_type=jnp.float32) + fcb_ref[...]      # (N, 4*Cin)
    wv1 = aff[:, 0 * Cin:1 * Cin]
    bv1 = aff[:, 1 * Cin:2 * Cin]
    aff2_ref[...] = aff[:, 2 * Cin:4 * Cin]          # CN2 affine, consumed later

    # CN1 batch stats in a single pass (E[x^2] - mean^2); inputs are O(1) so
    # cancellation is not a concern here.
    mean1 = jnp.sum(x, axis=0, keepdims=True) / M                         # (1, Cin)
    ex2 = jnp.sum(x * x, axis=0, keepdims=True) / M
    inv1 = jax.lax.rsqrt(ex2 - mean1 * mean1 + EPS)

    # fold BN + per-sample affine into one scale/shift, then ReLU
    scale1 = wv1 * inv1                                                   # (N, Cin)
    shift1 = bv1 - wv1 * mean1 * inv1
    xn = x.reshape(N, H * W, Cin)
    h = jnp.maximum(scale1[:, None, :] * xn + shift1[:, None, :], 0.0)
    h_ref[...] = h.reshape(N, H, W, Cin)

    # skip path: 1x1 conv at low resolution (commutes with nearest upsample)
    skip = jnp.dot(x, w3_ref[...],
                   preferred_element_type=jnp.float32) + b3_ref[...]      # (M, Cout)
    skip_ref[...] = skip.reshape(N, H, W, skip.shape[-1])


# ----------------------------------------------------------------------------
# Stage B: per-batch tile -- 2x upsample (in VMEM), conv1 as one im2col matmul,
#          and per-tile partial sums for the two-pass CN2 batch statistics.
# ----------------------------------------------------------------------------
def conv1_kernel(h_ref, w1_ref, b1_ref, t_ref, stat_ref, pad_ref, patch_ref):
    _, H, W, Cin = h_ref.shape
    H2, W2 = 2 * H, 2 * W
    M = H2 * W2

    up = _upsample2x_nn(h_ref[0])                       # (H2, W2, Cin), VMEM only

    _zero_border(pad_ref, H2, W2, Cin)
    pad_ref[1:H2 + 1, 1:W2 + 1, :] = up
    _im2col_3x3(pad_ref, patch_ref, H2, W2, Cin)

    conv = jnp.dot(patch_ref[...].reshape(M, 9 * Cin), w1_ref[...],
                   preferred_element_type=jnp.float32) + b1_ref[...]      # (M, Cin)
    t_ref[0] = conv.reshape(H2, W2, Cin)

    # partial sums for CN2 batch stats (reduced by tiny glue between stages)
    stat_ref[0, 0:1, :] = jnp.sum(conv, axis=0, keepdims=True)
    stat_ref[0, 1:2, :] = jnp.sum(conv * conv, axis=0, keepdims=True)


# ----------------------------------------------------------------------------
# Stage C: per-batch tile -- folded CN2 affine + ReLU, conv2 as one im2col
#          matmul, then add the (upsampled-in-VMEM) 1x1 skip.
# ----------------------------------------------------------------------------
def conv2_kernel(t_ref, scale_ref, shift_ref, skip_ref, w2_ref, b2_ref,
                 out_ref, pad_ref, patch_ref):
    _, H2, W2, Cin = t_ref.shape
    Cout = w2_ref.shape[1]
    M = H2 * W2

    sc = scale_ref[0]                                   # (1, Cin)
    sh = shift_ref[0]
    z = jnp.maximum(sc * t_ref[0].reshape(M, Cin) + sh, 0.0)

    _zero_border(pad_ref, H2, W2, Cin)
    pad_ref[1:H2 + 1, 1:W2 + 1, :] = z.reshape(H2, W2, Cin)
    _im2col_3x3(pad_ref, patch_ref, H2, W2, Cin)

    conv = jnp.dot(patch_ref[...].reshape(M, 9 * Cin), w2_ref[...],
                   preferred_element_type=jnp.float32) + b2_ref[...]      # (M, Cout)

    skip = _upsample2x_nn(skip_ref[0]).reshape(M, Cout)
    out_ref[0] = (conv + skip).reshape(H2, W2, Cout)


# ----------------------------------------------------------------------------
# Wrapper: layout conversion (pre-upsample resolution only), weight prep,
# three pallas_calls, O(N*C) stat-folding glue.
# ----------------------------------------------------------------------------
def res_up_pallas(x_nchw, features, p):
    N, Cin, H, W = x_nchw.shape
    Cout = p['w2'].shape[0]
    H2, W2 = 2 * H, 2 * W
    f32 = jnp.float32

    # NHWC at ORIGINAL resolution (tiny); the 2x replication happens in-kernel.
    x_lo = jnp.transpose(x_nchw, (0, 2, 3, 1)).astype(f32)
    feat = features.astype(f32)

    # conv weights: OIHW -> HWIO, flattened to im2col form (K = 9*Cin)
    w1col = jnp.transpose(p['w1'], (2, 3, 1, 0)).reshape(9 * Cin, Cin)
    w2col = jnp.transpose(p['w2'], (2, 3, 1, 0)).reshape(9 * Cin, Cout)
    w3 = jnp.transpose(p['w3'][:, :, 0, 0], (1, 0))                       # (Cin, Cout)
    b1 = p['b1'].reshape(1, Cin)
    b2 = p['b2'].reshape(1, Cout)
    b3 = p['b3'].reshape(1, Cout)

    # fuse the four conditional-norm linears into one (F, 4*Cin) matmul
    fc_w = jnp.concatenate([p['fcw1_w'], p['fcb1_w'], p['fcw2_w'], p['fcb2_w']], axis=1)
    fc_b = jnp.concatenate([p['fcw1_b'], p['fcb1_b'], p['fcw2_b'], p['fcb2_b']]
                           ).reshape(1, 4 * Cin)

    vmem = pl.BlockSpec(memory_space=pltpu.MemorySpace.VMEM)

    # ---- stage A: low-res prep (CN1 + ReLU, 1x1 skip, fused CN linears) -----
    h_lo, skip_lo, aff2 = pl.pallas_call(
        prep_kernel,
        out_shape=(jax.ShapeDtypeStruct((N, H, W, Cin), f32),
                   jax.ShapeDtypeStruct((N, H, W, Cout), f32),
                   jax.ShapeDtypeStruct((N, 2 * Cin), f32)),
        in_specs=[vmem] * 6,
        out_specs=(vmem, vmem, vmem),
        compiler_params=pltpu.CompilerParams(vmem_limit_bytes=VMEM_LIMIT),
    )(x_lo, feat, w3, b3, fc_w, fc_b)

    # ---- stage B: upsample + conv1 + partial CN2 stats, tiled over batch ----
    t, part = pl.pallas_call(
        conv1_kernel,
        out_shape=(jax.ShapeDtypeStruct((N, H2, W2, Cin), f32),
                   jax.ShapeDtypeStruct((N, 2, Cin), f32)),
        grid=(N,),
        in_specs=[pl.BlockSpec((1, H, W, Cin), lambda n: (n, 0, 0, 0)),
                  pl.BlockSpec((9 * Cin, Cin), lambda n: (0, 0)),
                  pl.BlockSpec((1, Cin), lambda n: (0, 0))],
        out_specs=(pl.BlockSpec((1, H2, W2, Cin), lambda n: (n, 0, 0, 0)),
                   pl.BlockSpec((1, 2, Cin), lambda n: (n, 0, 0))),
        scratch_shapes=[pltpu.VMEM((H2 + 2, W2 + 2, Cin), f32),
                        pltpu.VMEM((H2, W2, 9 * Cin), f32)],
        compiler_params=pltpu.CompilerParams(
            dimension_semantics=("parallel",), vmem_limit_bytes=VMEM_LIMIT),
    )(h_lo, w1col, b1)

    # ---- tiny O(N*Cin) glue: finish two-pass BN stats, fold into CN2 affine --
    M2 = N * H2 * W2
    mean2 = jnp.sum(part[:, 0, :], axis=0) / M2                           # (Cin,)
    ex2 = jnp.sum(part[:, 1, :], axis=0) / M2
    inv2 = jax.lax.rsqrt(ex2 - mean2 * mean2 + EPS)
    wv2, bv2 = aff2[:, :Cin], aff2[:, Cin:]
    scale2 = (wv2 * inv2[None, :]).reshape(N, 1, Cin)
    shift2 = (bv2 - wv2 * (mean2 * inv2)[None, :]).reshape(N, 1, Cin)

    # ---- stage C: CN2 + ReLU + conv2 + residual skip, tiled over batch ------
    out_nhwc = pl.pallas_call(
        conv2_kernel,
        out_shape=jax.ShapeDtypeStruct((N, H2, W2, Cout), f32),
        grid=(N,),
        in_specs=[pl.BlockSpec((1, H2, W2, Cin), lambda n: (n, 0, 0, 0)),
                  pl.BlockSpec((1, 1, Cin), lambda n: (n, 0, 0)),
                  pl.BlockSpec((1, 1, Cin), lambda n: (n, 0, 0)),
                  pl.BlockSpec((1, H, W, Cout), lambda n: (n, 0, 0, 0)),
                  pl.BlockSpec((9 * Cin, Cout), lambda n: (0, 0)),
                  pl.BlockSpec((1, Cout), lambda n: (0, 0))],
        out_specs=pl.BlockSpec((1, H2, W2, Cout), lambda n: (n, 0, 0, 0)),
        scratch_shapes=[pltpu.VMEM((H2 + 2, W2 + 2, Cin), f32),
                        pltpu.VMEM((H2, W2, 9 * Cin), f32)],
        compiler_params=pltpu.CompilerParams(
            dimension_semantics=("parallel",), vmem_limit_bytes=VMEM_LIMIT),
    )(t, scale2, shift2, skip_lo, w2col, b2)

    return jnp.transpose(out_nhwc, (0, 3, 1, 2))                          # back to NCHW


# ----------------------------------------------------------------------------
# Parameter setup (deterministic, synthetic) + pure-JAX reference.
# ----------------------------------------------------------------------------
def spectral_normalize(w_oihw, n_iter=30):
    """Divide a conv weight (OIHW) by its largest singular value (power iter)."""
    o = w_oihw.shape[0]
    w_mat = w_oihw.reshape(o, -1)
    u = jnp.ones((o,), jnp.float32) / jnp.sqrt(float(o))
    v = None
    for _ in range(n_iter):
        v = w_mat.T @ u
        v = v / (jnp.linalg.norm(v) + 1e-12)
        u = w_mat @ v
        u = u / (jnp.linalg.norm(u) + 1e-12)
    sigma = u @ (w_mat @ v)
    return w_oihw / sigma


def init_params(key, Cin, Cout, F):
    ks = jax.random.split(key, 14)
    p = {
        'w1': spectral_normalize(0.3 * jax.random.normal(ks[0], (Cin, Cin, 3, 3), jnp.float32)),
        'b1': 0.1 * jax.random.normal(ks[1], (Cin,), jnp.float32),
        'w2': spectral_normalize(0.3 * jax.random.normal(ks[2], (Cout, Cin, 3, 3), jnp.float32)),
        'b2': 0.1 * jax.random.normal(ks[3], (Cout,), jnp.float32),
        'w3': spectral_normalize(0.3 * jax.random.normal(ks[4], (Cout, Cin, 1, 1), jnp.float32)),
        'b3': 0.1 * jax.random.normal(ks[5], (Cout,), jnp.float32),
        'fcw1_w': 0.2 * jax.random.normal(ks[6], (F, Cin), jnp.float32),
        'fcw1_b': 1.0 + 0.1 * jax.random.normal(ks[7], (Cin,), jnp.float32),
        'fcb1_w': 0.2 * jax.random.normal(ks[8], (F, Cin), jnp.float32),
        'fcb1_b': 0.1 * jax.random.normal(ks[9], (Cin,), jnp.float32),
        'fcw2_w': 0.2 * jax.random.normal(ks[10], (F, Cin), jnp.float32),
        'fcw2_b': 1.0 + 0.1 * jax.random.normal(ks[11], (Cin,), jnp.float32),
        'fcb2_w': 0.2 * jax.random.normal(ks[12], (F, Cin), jnp.float32),
        'fcb2_b': 0.1 * jax.random.normal(ks[13], (Cin,), jnp.float32),
    }
    return p


def res_up_reference(x, feat, p):
    """Literal NCHW translation of the PyTorch forward (plain JAX)."""
    def up2(t):
        return jnp.repeat(jnp.repeat(t, 2, axis=2), 2, axis=3)

    def conv(t, w, b, pad):
        y = jax.lax.conv_general_dilated(
            t, w, (1, 1), [(pad, pad), (pad, pad)],
            dimension_numbers=('NCHW', 'OIHW', 'NCHW'))
        return y + b[None, :, None, None]

    def cond_norm(t, fw, fwb, fb, fbb):
        mean = jnp.mean(t, axis=(0, 2, 3), keepdims=True)
        var = jnp.mean((t - mean) ** 2, axis=(0, 2, 3), keepdims=True)
        norm = (t - mean) / jnp.sqrt(var + EPS)
        w = feat @ fw + fwb
        b = feat @ fb + fbb
        return w[:, :, None, None] * norm + b[:, :, None, None]

    skip = conv(up2(x), p['w3'], p['b3'], 0)
    h = jax.nn.relu(cond_norm(x, p['fcw1_w'], p['fcw1_b'], p['fcb1_w'], p['fcb1_b']))
    h = up2(h)
    h = jax.nn.relu(cond_norm(conv(h, p['w1'], p['b1'], 1),
                              p['fcw2_w'], p['fcw2_b'], p['fcb2_w'], p['fcb2_b']))
    h = conv(h, p['w2'], p['b2'], 1)
    return h + skip


if __name__ == "__main__":
    N, Cin, Cout, F, H, W = 2, 4, 8, 16, 8, 8
    key = jax.random.PRNGKey(0)
    kx, kf, kp = jax.random.split(key, 3)
    x = jax.random.normal(kx, (N, Cin, H, W), jnp.float32)
    feat = jax.random.normal(kf, (N, F), jnp.float32)
    params = init_params(kp, Cin, Cout, F)

    out = res_up_pallas(x, feat, params)
    out = jax.block_until_ready(out)
    assert out.shape == (N, Cout, 2 * H, 2 * W), out.shape

    ref = res_up_reference(x, feat, params)
    # loose tolerance: MXU f32 matmul precision vs XLA conv precision differ slightly
    if not bool(jnp.allclose(out, ref, rtol=3e-2, atol=3e-2)):
        raise AssertionError(
            f"mismatch vs reference, max abs diff = {float(jnp.max(jnp.abs(out - ref)))}")

    print("KERNEL_OK")
</pallas_src>

<mosaic_0001>
module attributes {stable_mosaic.version = 11 : i64} {
  func.func @prep_kernel(%arg0: memref<2x8x8x4xf32, #tpu.memory_space<vmem>>, %arg1: memref<2x16xf32, #tpu.memory_space<vmem>>, %arg2: memref<4x8xf32, #tpu.memory_space<vmem>>, %arg3: memref<1x8xf32, #tpu.memory_space<vmem>>, %arg4: memref<16x16xf32, #tpu.memory_space<vmem>>, %arg5: memref<1x16xf32, #tpu.memory_space<vmem>>, %arg6: memref<2x8x8x4xf32, #tpu.memory_space<vmem>>, %arg7: memref<2x8x8x8xf32, #tpu.memory_space<vmem>>, %arg8: memref<2x8xf32, #tpu.memory_space<vmem>>) attributes {dimension_semantics = [], scalar_prefetch = 0 : i64, scratch_operands = 0 : i64, tpu.core_type = #tpu.core_type<tc>} {
    %c0 = arith.constant 0 : index
    %c0_0 = arith.constant 0 : index
    %c0_1 = arith.constant 0 : index
    %c0_2 = arith.constant 0 : index
    %0 = vector.load %arg0[%c0, %c0_0, %c0_1, %c0_2] : memref<2x8x8x4xf32, #tpu.memory_space<vmem>>, vector<2x8x8x4xf32>
    %1 = vector.shape_cast %0 : vector<2x8x8x4xf32> to vector<128x4xf32>
    %c0_3 = arith.constant 0 : index
    %c0_4 = arith.constant 0 : index
    %2 = vector.load %arg1[%c0_3, %c0_4] : memref<2x16xf32, #tpu.memory_space<vmem>>, vector<2x16xf32>
    %c0_5 = arith.constant 0 : index
    %c0_6 = arith.constant 0 : index
    %3 = vector.load %arg4[%c0_5, %c0_6] : memref<16x16xf32, #tpu.memory_space<vmem>>, vector<16x16xf32>
    %cst = arith.constant dense<0.000000e+00> : vector<2x16xf32>
    %4 = tpu.matmul %2, %3, %cst {dimension_numbers = #tpu.dot_dimension_numbers<[1], [0], [0], [1], [0, 0, 1, 1], [], []>} : vector<2x16xf32>, vector<16x16xf32>, vector<2x16xf32> -> vector<2x16xf32>
    %c0_7 = arith.constant 0 : index
    %c0_8 = arith.constant 0 : index
    %5 = vector.load %arg5[%c0_7, %c0_8] : memref<1x16xf32, #tpu.memory_space<vmem>>, vector<1x16xf32>
    %6 = vector.broadcast %5 : vector<1x16xf32> to vector<2x16xf32>
    %7 = arith.addf %4, %6 : vector<2x16xf32>
    %8 = vector.extract_strided_slice %7 {offsets = [0, 0], sizes = [2, 4], strides = [1, 1]} : vector<2x16xf32> to vector<2x4xf32>
    %9 = vector.extract_strided_slice %7 {offsets = [0, 4], sizes = [2, 4], strides = [1, 1]} : vector<2x16xf32> to vector<2x4xf32>
    %10 = vector.extract_strided_slice %7 {offsets = [0, 8], sizes = [2, 8], strides = [1, 1]} : vector<2x16xf32> to vector<2x8xf32>
    %c0_9 = arith.constant 0 : index
    %c0_10 = arith.constant 0 : index
    %11 = vector.load %arg8[%c0_9, %c0_10] : memref<2x8xf32, #tpu.memory_space<vmem>>, vector<2x8xf32>
    tpu.vector_store %arg8[%c0_9, %c0_10], %10 {strides = array<i32>} : memref<2x8xf32, #tpu.memory_space<vmem>>, vector<2x8xf32>,
    %cst_11 = arith.constant dense<0.000000e+00> : vector<4xf32>
    %12 = vector.multi_reduction <add>, %1, %cst_11 [0] : vector<128x4xf32> to vector<4xf32>
    %13 = vector.shape_cast %12 : vector<4xf32> to vector<1x4xf32>
    %cst_12 = arith.constant 1.280000e+02 : f32
    %14 = vector.broadcast %cst_12 : f32 to vector<1x4xf32>
    %15 = arith.divf %13, %14 : vector<1x4xf32>
    %16 = arith.mulf %1, %1 : vector<128x4xf32>
    %cst_13 = arith.constant dense<0.000000e+00> : vector<4xf32>
    %17 = vector.multi_reduction <add>, %16, %cst_13 [0] : vector<128x4xf32> to vector<4xf32>
    %18 = vector.shape_cast %17 : vector<4xf32> to vector<1x4xf32>
    %cst_14 = arith.constant 1.280000e+02 : f32
    %19 = vector.broadcast %cst_14 : f32 to vector<1x4xf32>
    %20 = arith.divf %18, %19 : vector<1x4xf32>
    %21 = arith.mulf %15, %15 : vector<1x4xf32>
    %22 = arith.subf %20, %21 : vector<1x4xf32>
    %cst_15 = arith.constant 9.99999974E-6 : f32
    %23 = vector.broadcast %cst_15 : f32 to vector<1x4xf32>
    %24 = arith.addf %22, %23 : vector<1x4xf32>
    %25 = math.rsqrt %24 : vector<1x4xf32>
    %26 = vector.broadcast %25 : vector<1x4xf32> to vector<2x4xf32>
    %27 = arith.mulf %8, %26 : vector<2x4xf32>
    %28 = vector.broadcast %15 : vector<1x4xf32> to vector<2x4xf32>
    %29 = arith.mulf %8, %28 : vector<2x4xf32>
    %30 = vector.broadcast %25 : vector<1x4xf32> to vector<2x4xf32>
    %31 = arith.mulf %29, %30 : vector<2x4xf32>
    %32 = arith.subf %9, %31 : vector<2x4xf32>
    %33 = vector.shape_cast %1 : vector<128x4xf32> to vector<2x64x4xf32>
    %34 = vector.shape_cast %27 : vector<2x4xf32> to vector<2x1x4xf32>
    %35 = vector.broadcast %34 : vector<2x1x4xf32> to vector<2x64x4xf32>
    %36 = arith.mulf %35, %33 : vector<2x64x4xf32>
    %37 = vector.shape_cast %32 : vector<2x4xf32> to vector<2x1x4xf32>
    %38 = vector.broadcast %37 : vector<2x1x4xf32> to vector<2x64x4xf32>
    %39 = arith.addf %36, %38 : vector<2x64x4xf32>
    %cst_16 = arith.constant 0.000000e+00 : f32
    %40 = vector.broadcast %cst_16 : f32 to vector<2x64x4xf32>
    %41 = arith.maximumf %39, %40 : vector<2x64x4xf32>
    %42 = vector.shape_cast %41 : vector<2x64x4xf32> to vector<2x8x8x4xf32>
    %c0_17 = arith.constant 0 : index
    %c0_18 = arith.constant 0 : index
    %c0_19 = arith.constant 0 : index
    %c0_20 = arith.constant 0 : index
    %43 = vector.load %arg6[%c0_17, %c0_18, %c0_19, %c0_20] : memref<2x8x8x4xf32, #tpu.memory_space<vmem>>, vector<2x8x8x4xf32>
    tpu.vector_store %arg6[%c0_17, %c0_18, %c0_19, %c0_20], %42 {strides = array<i32>} : memref<2x8x8x4xf32, #tpu.memory_space<vmem>>, vector<2x8x8x4xf32>,
    %c0_21 = arith.constant 0 : index
    %c0_22 = arith.constant 0 : index
    %44 = vector.load %arg2[%c0_21, %c0_22] : memref<4x8xf32, #tpu.memory_space<vmem>>, vector<4x8xf32>
    %cst_23 = arith.constant dense<0.000000e+00> : vector<128x8xf32>
    %45 = tpu.matmul %1, %44, %cst_23 {dimension_numbers = #tpu.dot_dimension_numbers<[1], [0], [0], [1], [0, 0, 1, 1], [], []>} : vector<128x4xf32>, vector<4x8xf32>, vector<128x8xf32> -> vector<128x8xf32>
    %c0_24 = arith.constant 0 : index
    %c0_25 = arith.constant 0 : index
    %46 = vector.load %arg3[%c0_24, %c0_25] : memref<1x8xf32, #tpu.memory_space<vmem>>, vector<1x8xf32>
    %47 = vector.broadcast %46 : vector<1x8xf32> to vector<128x8xf32>
    %48 = arith.addf %45, %47 : vector<128x8xf32>
    %49 = vector.shape_cast %48 : vector<128x8xf32> to vector<2x8x8x8xf32>
    %c0_26 = arith.constant 0 : index
    %c0_27 = arith.constant 0 : index
    %c0_28 = arith.constant 0 : index
    %c0_29 = arith.constant 0 : index
    %50 = vector.load %arg7[%c0_26, %c0_27, %c0_28, %c0_29] : memref<2x8x8x8xf32, #tpu.memory_space<vmem>>, vector<2x8x8x8xf32>
    tpu.vector_store %arg7[%c0_26, %c0_27, %c0_28, %c0_29], %49 {strides = array<i32>} : memref<2x8x8x8xf32, #tpu.memory_space<vmem>>, vector<2x8x8x8xf32>,
    return
  }
}

</mosaic_0001>

<bundles_post_ra>
// kernel: tpu_custom_call.1
= control target key start
LH: loop header
LB: loop body
LE: loop exit
PB: predicated region body
PF: predicated region fallthrough
CT: control target
= control target key end

     0   :  { %14 = vsyncpa [#allocation3], 0  ;;  %v769_v2 = vmov 0.0|0.0   ;;  %vm770_vm0 = vmmov 0   ;;  %v771_v4 = vmov 0.0   ;;  %s1173_s0 = inlined_call_operand.vmem [shape: f32[2,8,8,4], index: 0, kind: input, shape index: {}]   ;;  %s1174_s1 = inlined_call_operand.vmem [shape: f32[2,16], index: 1, kind: input, shape index: {}]   ;;  %s1175_s2 = inlined_call_operand.vmem [shape: f32[4,8], index: 2, kind: input, shape index: {}]   ;;  %s1176_s3 = inlined_call_operand.vmem [shape: f32[1,8], index: 3, kind: input, shape index: {}]   ;;  %s1177_s4 = inlined_call_operand.vmem [shape: f32[16,16], index: 4, kind: input, shape index: {}]   ;;  %s1178_s5 = inlined_call_operand.vmem [shape: f32[1,16], index: 5, kind: input, shape index: {}]   ;;  %s1179_s6 = inlined_call_operand.vmem [shape: f32[2,8,8,4], index: 6, kind: output, shape index: {0}]   ;;  %s1180_s7 = inlined_call_operand.hbm [shape: f32[2,8,8,8], index: 7, kind: output, shape index: {1}]   ;;  %s1181_s8 = inlined_call_operand.hbm [shape: f32[2,8], index: 8, kind: output, shape index: {2}]  }
   0x1   :  { %v45_v0 = vld [vmem:[%s1177_s4] sm:$0xff]  ;;  %v46_v1 = vld [vmem:[%s1177_s4 + $0x8] sm:$0xff]  ;;  %703 = vmatprep.subr.bf16.mxu0 %v769_v2  ;;  %674 = vmatprep.mubr.msk.f32.mxu0 %vm770_vm0, %v771_v4 }
   0x2   :  { %v704_v3 = vpack.c.bf16 %v46_v1, %v45_v0 }
   0x3   :  { %15 = vsyncpa [#allocation5], 0  ;;  %v44_v5 = vld [vmem:[%s1174_s1] sm:$0x3]  ;;  %vm54_vm1 = vcmask 130048   ;;  %vm134_vm2 = vcmask 31744  }
   0x4   :  { %705 = vmatpush3.bf16.msra.mxu0 %v704_v3  ;;  %v837_v6 = vld [vmem:[%s1173_s0] sm:$0xff]  ;;  %v844_v7 = vld [vmem:[%s1173_s0 + $0x30] sm:$0xff]  ;;  %vm430_vm3 = vcmask 1043456   ;;  %v854_v9 = vld [vmem:[%s1173_s0 + $0x8] sm:$0xff]  ;;  %s772_s19 = smov 4   ;;  %vm579_vm4 = vcmask 64512  }
   0x5   :  { %688 = vmatprep.mubr.msk.f32.mxu1 %vm134_vm2, %v844_v7  ;;  %v374_v8 = vld [vmem:[%s1175_s2] sm:$0xf]  ;;  %v859_v10 = vld [vmem:[%s1173_s0 + $0x38] sm:$0xff]  ;;  %v864_v11 = vld [vmem:[%s1173_s0 + $0x10] sm:$0xff]  ;;  %v135_v19 = vsel %vm134_vm2, %v837_v6, 0.0  ;;  %v136_v20 = vsel %vm134_vm2, %v854_v9, 0.0  ;;  %v174_v21 = vmul.f32 %v837_v6, %v837_v6  ;;  %v175_v22 = vmul.f32 %v854_v9, %v854_v9 }
   0x6   :  { %706 = vmatprep.subr.msk.mxu1 %vm430_vm3, %v374_v8  ;;  %677 = vmatprep.subr.msk.mxu0 %vm430_vm3, %v374_v8  ;;  %v869_v12 = vld [vmem:[%s1173_s0 + $0x40] sm:$0xff]  ;;  %v882_v13 = vld [vmem:[%s1173_s0 + $0x18] sm:$0xff]  ;;  %v887_v14 = vld [vmem:[%s1173_s0 + $0x48] sm:$0xff]  ;;  %v137_v24 = vadd.f32 %v136_v20, %v135_v19  ;;  %v138_v26 = vsel %vm134_vm2, %v864_v11, 0.0  ;;  %v176_v27 = vmul.f32 %v864_v11, %v864_v11  ;;  %v146_v49 = vsel %vm134_vm2, %v844_v7, 0.0 }
   0x7   :  { %675 = vmatmul.mubr.msk.f32.vlgmr.msra.gmra.mrb[0].mxu0 %vm54_vm1, %v44_v5  ;;  %707 = vmatpush3.msk.msra.mxu1 %vm430_vm3, %v374_v8  ;;  %v892_v15 = vld [vmem:[%s1173_s0 + $0x20] sm:$0xff]  ;;  %v897_v16 = vld [vmem:[%s1173_s0 + $0x50] sm:$0xff]  ;;  %v910_v17 = vld [vmem:[%s1173_s0 + $0x28] sm:$0xff]  ;;  %v190_v28 = vsel %vm134_vm2, %v174_v21, 0.0  ;;  %v191_v29 = vsel %vm134_vm2, %v175_v22, 0.0  ;;  %v140_v34 = vsel %vm134_vm2, %v882_v13, 0.0  ;;  %v177_v35 = vmul.f32 %v882_v13, %v882_v13 }
   0x8   :  { %679 = vmatprep.mubr.msk.f32.mxu0 %vm134_vm2, %v837_v6  ;;  %678 = vmatpush3.msk.msra.mxu0 %vm430_vm3, %v374_v8  ;;  %v915_v18 = vld [vmem:[%s1173_s0 + $0x58] sm:$0xff]  ;;  %v928_v23 = vld [vmem:[%s1173_s0 + $0x60] sm:$0xff]  ;;  %v939_v25 = vld [vmem:[%s1173_s0 + $0x68] sm:$0xff]  ;;  %v139_v31 = vadd.f32 %v138_v26, %v137_v24  ;;  %v192_v32 = vadd.f32 %v191_v29, %v190_v28  ;;  %v193_v36 = vsel %vm134_vm2, %v176_v27, 0.0  ;;  %v142_v39 = vsel %vm134_vm2, %v892_v15, 0.0 }
   0x9   :  { %689 = vmatmul.mubr.msk.f32.vlgmr.msra.gmra.mrb[0].mxu1 %vm134_vm2, %v859_v10  ;;  %v950_v30 = vld [vmem:[%s1173_s0 + $0x70] sm:$0xff]  ;;  %v959_v33 = vld [vmem:[%s1173_s0 + $0x78] sm:$0xff]  ;;  %v178_v40 = vmul.f32 %v892_v15, %v892_v15  ;;  %v195_v41 = vsel %vm134_vm2, %v177_v35, 0.0  ;;  %v144_v44 = vsel %vm134_vm2, %v910_v17, 0.0  ;;  %v179_v45 = vmul.f32 %v910_v17, %v910_v17 }
   0xa   :  { %691 = vmatprep.mubr.msk.f32.mxu1 %vm134_vm2, %v869_v12  ;;  %v141_v37 = vadd.f32 %v140_v34, %v139_v31  ;;  %v194_v38 = vadd.f32 %v193_v36, %v192_v32  ;;  %v180_v50 = vmul.f32 %v844_v7, %v844_v7  ;;  %v148_v54 = vsel %vm134_vm2, %v859_v10, 0.0 }
   0xb   :  { %680 = vmatmul.mubr.msk.f32.vlgmr.msra.gmra.mrb[2].mxu0 %vm134_vm2, %v854_v9  ;;  %v197_v46 = vsel %vm134_vm2, %v178_v40, 0.0  ;;  %v199_v51 = vsel %vm134_vm2, %v179_v45, 0.0  ;;  %v181_v55 = vmul.f32 %v859_v10, %v859_v10  ;;  %v150_v59 = vsel %vm134_vm2, %v869_v12, 0.0 }
   0xc   :  { %682 = vmatprep.mubr.msk.f32.mxu0 %vm134_vm2, %v864_v11  ;;  %v143_v42 = vadd.f32 %v142_v39, %v141_v37  ;;  %v196_v43 = vadd.f32 %v195_v41, %v194_v38  ;;  %v201_v56 = vsel %vm134_vm2, %v180_v50, 0.0  ;;  %v182_v60 = vmul.f32 %v869_v12, %v869_v12 }
   0xd   :  { %692 = vmatmul.mubr.msk.f32.gmra.mrb[2].mxu1 %vm134_vm2, %v887_v14  ;;  %v203_v61 = vsel %vm134_vm2, %v181_v55, 0.0  ;;  %v152_v0 = vsel %vm134_vm2, %v887_v14, 0.0  ;;  %v183_v1 = vmul.f32 %v887_v14, %v887_v14  ;;  %v154_v5 = vsel %vm134_vm2, %v897_v16, 0.0 }
   0xe   :  { %694 = vmatprep.mubr.msk.f32.mxu1 %vm134_vm2, %v897_v16  ;;  %v145_v47 = vadd.f32 %v144_v44, %v143_v42  ;;  %v198_v48 = vadd.f32 %v197_v46, %v196_v43  ;;  %v205_v2 = vsel %vm134_vm2, %v182_v60, 0.0  ;;  %v184_v8 = vmul.f32 %v897_v16, %v897_v16 }
   0xf   :  { %683 = vmatmul.mubr.msk.f32.gmra.mrb[4].mxu0 %vm134_vm2, %v882_v13  ;;  %v207_v19 = vsel %vm134_vm2, %v183_v1, 0.0  ;;  %v156_v22 = vsel %vm134_vm2, %v915_v18, 0.0  ;;  %v185_v24 = vmul.f32 %v915_v18, %v915_v18  ;;  %v158_v29 = vsel %vm134_vm2, %v928_v23, 0.0 }
  0x10   :  { %685 = vmatprep.mubr.msk.f32.mxu0 %vm134_vm2, %v892_v15  ;;  %v147_v52 = vadd.f32 %v146_v49, %v145_v47  ;;  %v200_v53 = vadd.f32 %v199_v51, %v198_v48  ;;  %v209_v26 = vsel %vm134_vm2, %v184_v8, 0.0  ;;  %v186_v31 = vmul.f32 %v928_v23, %v928_v23  ;;  %v630_v8 = vld [vmem:[%s1178_s5] ss:$0 sm:$0xff] }
  0x11   :  { %695 = vmatmul.mubr.msk.f32.gmra.mrb[4].mxu1 %vm134_vm2, %v915_v18  ;;  %v211_v32 = vsel %vm134_vm2, %v185_v24, 0.0  ;;  %v160_v36 = vsel %vm134_vm2, %v939_v25, 0.0  ;;  %v187_v37 = vmul.f32 %v939_v25, %v939_v25  ;;  %v162_v41 = vsel %vm134_vm2, %v950_v30, 0.0 }
  0x12   :  { %697 = vmatprep.mubr.msk.f32.mxu1 %vm134_vm2, %v928_v23  ;;  %v149_v57 = vadd.f32 %v148_v54, %v147_v52  ;;  %v202_v58 = vadd.f32 %v201_v56, %v200_v53  ;;  %v213_v38 = vsel %vm134_vm2, %v186_v31, 0.0  ;;  %v188_v42 = vmul.f32 %v950_v30, %v950_v30 }
  0x13   :  { %686 = vmatmul.mubr.msk.f32.gmra.mrb[6].mxu0 %vm134_vm2, %v910_v17  ;;  %v215_v43 = vsel %vm134_vm2, %v187_v37, 0.0  ;;  %v164_v46 = vsel %vm134_vm2, %v959_v33, 0.0  ;;  %v189_v47 = vmul.f32 %v959_v33, %v959_v33 }
  0x14   :  { %v151_v62 = vadd.f32 %v150_v59, %v149_v57  ;;  %v204_v63 = vadd.f32 %v203_v61, %v202_v58  ;;  %v217_v48 = vsel %vm134_vm2, %v188_v42, 0.0 }
  0x15   :  { %698 = vmatmul.mubr.msk.f32.gmra.mrb[6].mxu1 %vm134_vm2, %v939_v25  ;;  %v219_v51 = vsel %vm134_vm2, %v189_v47, 0.0 }
  0x16   :  { %700 = vmatprep.mubr.msk.f32.mxu1 %vm134_vm2, %v950_v30  ;;  %v153_v3 = vadd.f32 %v152_v0, %v151_v62  ;;  %v206_v4 = vadd.f32 %v205_v2, %v204_v63 }
  0x18   :  { %v155_v20 = vadd.f32 %v154_v5, %v153_v3  ;;  %v208_v21 = vadd.f32 %v207_v19, %v206_v4 }
  0x19   :  { %701 = vmatmul.mubr.msk.f32.gmra.mrb[8].mxu1 %vm134_vm2, %v959_v33 }
  0x1a   :  { %v157_v27 = vadd.f32 %v156_v22, %v155_v20  ;;  %v210_v28 = vadd.f32 %v209_v26, %v208_v21 }
  0x1c   :  { %v159_v34 = vadd.f32 %v158_v29, %v157_v27  ;;  %v212_v35 = vadd.f32 %v211_v32, %v210_v28  ;;  %v632_v27 = vld [vmem:[%s1176_s3] ss:$0 sm:$0xff]  ;;  %s774_s3 = smov [#allocation2]  }
  0x1d   :  { %s603_s5 = sshll.u32 %s774_s3, 4  ;;  %s604_s5 = int_to_ptr.vmem [resolvable:$true] %s603_s5 }
  0x1e   :  { %v161_v39 = vadd.f32 %v160_v36, %v159_v34  ;;  %v214_v40 = vadd.f32 %v213_v38, %v212_v35  ;;  %s721_s21 = scalar_lea.vmem %s604_s5, 2048  ;;  %p726_p1 = scmp.lt.s32.totalorder %s604_s5, %s604_s5 }
  0x1f   :  { %p722_p0 = scmp.ne.s32.totalorder %s604_s5, %s721_s21  ;;  %p727_p2 = scmp.lt.s32.totalorder %s721_s21, %s721_s21 }
  0x20   :  { %v163_v44 = vadd.f32 %v162_v41, %v161_v39  ;;  %v216_v45 = vadd.f32 %v215_v43, %v214_v40 }
  0x21   :  { %p728_p3 = por %p727_p2, %p726_p1 }
  0x22   :  { %v165_v49 = vadd.f32 %v164_v46, %v163_v44  ;;  %v218_v50 = vadd.f32 %v217_v48, %v216_v45 }
  0x23   :  { %p729_p4 = pnand %p728_p3, %p722_p0 }
  0x24   :  { %v166_v52 = vrot.slane %v165_v49, 4  ;;  %v220_v53 = vadd.f32 %v219_v51, %v218_v50 }
  0x26   :  { %v167_v54 = vadd.f32 %v166_v52, %v165_v49  ;;  %v221_v55 = vrot.slane %v220_v53, 4 }
  0x28   :  { %v168_v56 = vrot.slane %v167_v54, 2  ;;  %v222_v57 = vadd.f32 %v221_v55, %v220_v53 }
  0x2a   :  { %v169_v58 = vadd.f32 %v168_v56, %v167_v54  ;;  %v223_v59 = vrot.slane %v222_v57, 2  ;;  %v773_v54 = vmov 1966171168   ;;  %v244_v56 = vlaneseq }
  0x2b   :  { %v242_v55 = vunpack.c.l.s4 %v773_v54 }
  0x2c   :  { %v170_v60 = vrot.slane %v169_v58, 1  ;;  %v224_v61 = vadd.f32 %v223_v59, %v222_v57 }
  0x2d   :  { %v243_v57 = vunpack.c.0.s8 %v242_v55 }
  0x2e   :  { %v171_v62 = vadd.f32 %v170_v60, %v169_v58  ;;  %v225_v63 = vrot.slane %v224_v61, 1  ;;  %v245_v58 = vshrl.u32 %v244_v56, 7 }
  0x30   :  { %v173_v0 = vmul.f32 0.0078125, %v171_v62  ;;  %v226_v1 = vadd.f32 %v225_v63, %v224_v61  ;;  %v246_v62 = vsub.s32 %v243_v57, %v245_v58 }
  0x32   :  { %v227_v2 = vmul.f32 0.0078125, %v226_v1  ;;  %v228_v3 = vmul.f32 %v173_v0, %v173_v0 }
  0x34   :  { %v229_v4 = vsub.f32 %v227_v2, %v228_v3 }
  0x36   :  { %v230_v5 = vadd.f32 1e-05, %v229_v4 }
  0x38   :  { %719 = vrsqrt.f32 %v230_v5 }
  0x42   :  { %v1035_v24 = vpop.eup %719 }
  0xda   :  { %v124_v19 = vpop.f32.mrb[0].mxu0 }
  0xdb   :  { %v1032_v20 = vadd.f32 %v630_v8, %v124_v19  ;;  %v676_v21 = vpop.f32.mrb[1].mxu0 }
  0xdc   :  { %v690_v28 = vpop.f32.mrb[0].mxu1 }
  0xdd   :  { %v233_v22 = vmul.f32 %v173_v0, %v1032_v20  ;;  %v536_v31 = vadd.f32 %v690_v28, %v632_v27  ;;  %v530_v32 = vpop.f32.mrb[1].mxu1 }
  0xde   :  { %v681_v29 = vpop.f32.mrb[2].mxu0  ;;  %v531_v36 = vadd.f32 %v632_v27, %v530_v32 }
  0xdf   :  { %v234_v26 = vmul.f32 %v1035_v24, %v233_v22  ;;  %v506_v34 = vadd.f32 %v681_v29, %v632_v27  ;;  %v500_v35 = vpop.f32.mrb[3].mxu0  ;;  %587 = vst.msk [vmem:[#allocation2 + $0x38] sm:$0xff] %vm579_vm4, %v536_v31  ;;  %v265_v22 = vsub.s32 0, %v245_v58 }
  0xe0   :  { %v501_v37 = vadd.f32 %v632_v27, %v500_v35  ;;  %586 = vst.msk [vmem:[#allocation2 + $0x30] sm:$0xff] %vm579_vm4, %v531_v36  ;;  %v693_v38 = vpop.f32.mrb[2].mxu1 }
  0xe1   :  { %236 = vrot.lane.b32.xlu0 %v234_v26, %s772_s19  ;;  %581 = vst.msk [vmem:[#allocation2 + $0x8] sm:$0xff] %vm579_vm4, %v506_v34  ;;  %v546_v40 = vadd.f32 %v693_v38, %v632_v27  ;;  %v540_v41 = vpop.f32.mrb[3].mxu1 }
  0xe2   :  { %580 = vst.msk [vmem:[#allocation2] sm:$0xff] %vm579_vm4, %v501_v37  ;;  %v684_v39 = vpop.f32.mrb[4].mxu0  ;;  %v541_v44 = vadd.f32 %v632_v27, %v540_v41 }
  0xe3   :  { %v516_v42 = vadd.f32 %v684_v39, %v632_v27  ;;  %v510_v43 = vpop.f32.mrb[5].mxu0  ;;  %589 = vst.msk [vmem:[#allocation2 + $0x48] sm:$0xff] %vm579_vm4, %v546_v40 }
  0xe4   :  { %v511_v45 = vadd.f32 %v632_v27, %v510_v43  ;;  %588 = vst.msk [vmem:[#allocation2 + $0x40] sm:$0xff] %vm579_vm4, %v541_v44  ;;  %v696_v46 = vpop.f32.mrb[4].mxu1 }
  0xe5   :  { %583 = vst.msk [vmem:[#allocation2 + $0x18] sm:$0xff] %vm579_vm4, %v516_v42  ;;  %v556_v47 = vadd.f32 %v696_v46, %v632_v27  ;;  %v550_v48 = vpop.f32.mrb[5].mxu1 }
  0xe6   :  { %582 = vst.msk [vmem:[#allocation2 + $0x10] sm:$0xff] %vm579_vm4, %v511_v45  ;;  %v551_v49 = vadd.f32 %v632_v27, %v550_v48  ;;  %v687_v59 = vpop.f32.mrb[6].mxu0 }
  0xe7   :  { %591 = vst.msk [vmem:[#allocation2 + $0x58] sm:$0xff] %vm579_vm4, %v556_v47  ;;  %v526_v0 = vadd.f32 %v687_v59, %v632_v27  ;;  %v520_v2 = vpop.f32.mrb[7].mxu0 }
  0xe8   :  { %590 = vst.msk [vmem:[#allocation2 + $0x50] sm:$0xff] %vm579_vm4, %v551_v49  ;;  %v699_v50 = vpop.f32.mrb[6].mxu1  ;;  %v521_v4 = vadd.f32 %v632_v27, %v520_v2 }
  0xe9   :  { %v566_v51 = vadd.f32 %v699_v50, %v632_v27  ;;  %v560_v52 = vpop.f32.mrb[7].mxu1  ;;  %585 = vst.msk [vmem:[#allocation2 + $0x28] sm:$0xff] %vm579_vm4, %v526_v0 }
  0xea   :  { %v561_v53 = vadd.f32 %v632_v27, %v560_v52  ;;  %584 = vst.msk [vmem:[#allocation2 + $0x20] sm:$0xff] %vm579_vm4, %v521_v4 }
  0xeb   :  { %593 = vst.msk [vmem:[#allocation2 + $0x68] sm:$0xff] %vm579_vm4, %v566_v51 }
  0xec   :  { %592 = vst.msk [vmem:[#allocation2 + $0x60] sm:$0xff] %vm579_vm4, %v561_v53  ;;  %v702_v60 = vpop.f32.mrb[8].mxu1 }
  0xed   :  { %v576_v1 = vadd.f32 %v702_v60, %v632_v27  ;;  %v570_v3 = vpop.f32.mrb[9].mxu1 }
  0xee   :  { %v571_v5 = vadd.f32 %v632_v27, %v570_v3 }
  0xef   :  { %595 = vst.msk [vmem:[#allocation2 + $0x78] sm:$0xff] %vm579_vm4, %v576_v1 }
  0xf0   :  { %594 = vst.msk [vmem:[#allocation2 + $0x70] sm:$0xff] %vm579_vm4, %v571_v5 }
 0x153   :  { %v237_v61 = vpop.permute.xlu0 %236 }
 0x154   :  { %v239_v63 = vsub.f32 %v1032_v20, %v237_v61 }
 0x156   :  { %v296_v8 = vrot.slane %v239_v63, %v246_v62 }
 0x158   :  { %v297_v19 = vcombine.high %v296_v8, %v296_v8  ;;  %v304_v21 = vrot.slane %v296_v8, %v246_v62 }
 0x15a   :  { %v315_v26 = vrot.slane %v304_v21, %v265_v22  ;;  %v311_v28 = vrot.slane %v297_v19, %v246_v62 }
 0x15b   :  { %732 = shalt.err (!%p729_p4)
}
 0x15c   :  { %s733_s24 = scalar_lea.hbm %s1180_s7, 2048 }
 0x15d   :  { %p734_p5 = scmp.ne.s32.totalorder %s1180_s7, %s733_s24  ;;  %p737_p6 = scmp.lt.u32.totalorder %s733_s24, %s1180_s7 }
 0x15f   :  { %p739_p7 = pnand %p737_p6, %p734_p5 }
 0x161   :  { %742 = shalt.err (!%p739_p7)
}
 0x162   :  { %s775_s29 = smov 128   ;;  %s776_s30 = smov 8   ;;  %v319_v27 = vrot.slane %v311_v28, %v265_v22  ;;  %v232_v29 = vmul.f32 %v1035_v24, %v1032_v20  ;;  %vm132_vm5 = vcmask 58368  }
 0x163   :  { %609 = dma.vmem_to_hbm [thread:$0]  %s604_s5, 2048, %s1180_s7, [#allocation3], %s775_s29, %s775_s29, %s776_s30  }
 0x164   :  { %s777_s11 = smov 124   ;;  %s778_s12 = smov 120   ;;  %v247_v31 = vrot.slane %v232_v29, %v246_v62 }
 0x165   :  { %320 = vrot.lane.b32.xlu0 %v315_v26, %s777_s11  ;;  %322 = vrot.lane.b32.xlu1 %v319_v27, %s777_s11  ;;  %s779_s7 = smov [#allocation4]  }
 0x166   :  { %v248_v32 = vcombine.high %v247_v31, %v247_v31  ;;  %v255_v34 = vrot.slane %v247_v31, %v246_v62  ;;  %s616_s4 = sshll.u32 %s779_s7, 4  ;;  %s1105_s4 = int_to_ptr.vmem [resolvable:$true] %s616_s4 }
 0x167   :  { %s743_s24 = scalar_lea.vmem %s1105_s4, 32  ;;  %p748_p9 = scmp.lt.s32.totalorder %s1105_s4, %s1105_s4 }
 0x168   :  { %v262_v35 = vrot.slane %v248_v32, %v246_v62  ;;  %v266_v36 = vrot.slane %v255_v34, %v265_v22  ;;  %p744_p8 = scmp.ne.s32.totalorder %s1105_s4, %s743_s24  ;;  %p749_p10 = scmp.lt.s32.totalorder %s743_s24, %s743_s24 }
 0x169   :  { %129 = vrot.lane.b32.xlu1 %v1032_v20, %s778_s12 }
 0x16a   :  { %v270_v37 = vrot.slane %v262_v35, %v265_v22  ;;  %v273_v38 = vmul.f32 %v266_v36, %v837_v6  ;;  %v274_v39 = vmul.f32 %v266_v36, %v854_v9  ;;  %v275_v40 = vmul.f32 %v266_v36, %v864_v11  ;;  %p750_p11 = por %p749_p10, %p748_p9 }
 0x16b   :  { %v276_v41 = vmul.f32 %v266_v36, %v882_v13  ;;  %v277_v42 = vmul.f32 %v266_v36, %v892_v15  ;;  %v278_v43 = vmul.f32 %v266_v36, %v910_v17  ;;  %v279_v20 = vmul.f32 %v266_v36, %v844_v7 }
 0x16c   :  { %v280_v24 = vmul.f32 %v266_v36, %v859_v10  ;;  %v281_v44 = vmul.f32 %v270_v37, %v869_v12  ;;  %v282_v45 = vmul.f32 %v270_v37, %v887_v14  ;;  %v283_v6 = vmul.f32 %v270_v37, %v897_v16  ;;  %p751_p12 = pnand %p750_p11, %p744_p8 }
 0x16d   :  { %v284_v9 = vmul.f32 %v270_v37, %v915_v18  ;;  %v285_v11 = vmul.f32 %v270_v37, %v928_v23  ;;  %v286_v13 = vmul.f32 %v270_v37, %v939_v25  ;;  %v287_v15 = vmul.f32 %v270_v37, %v950_v30 }
 0x16e   :  { %v288_v17 = vmul.f32 %v270_v37, %v959_v33 }
 0x1d7   :  { %v321_v46 = vpop.permute.xlu0 %320  ;;  %v323_v50 = vpop.permute.xlu1 %322 }
 0x1d8   :  { %v326_v7 = vadd.f32 %v321_v46, %v273_v38  ;;  %v327_v10 = vadd.f32 %v321_v46, %v274_v39  ;;  %v328_v47 = vadd.f32 %v321_v46, %v275_v40  ;;  %v329_v12 = vadd.f32 %v321_v46, %v276_v41 }
 0x1d9   :  { %v330_v48 = vadd.f32 %v321_v46, %v277_v42  ;;  %v331_v14 = vadd.f32 %v321_v46, %v278_v43  ;;  %v332_v49 = vadd.f32 %v321_v46, %v279_v20  ;;  %v333_v16 = vadd.f32 %v321_v46, %v280_v24 }
 0x1da   :  { %v342_v18 = vmax.f32 %v326_v7, 0.0  ;;  %v343_v23 = vmax.f32 %v327_v10, 0.0  ;;  %v344_v51 = vmax.f32 %v328_v47, 0.0  ;;  %v345_v25 = vmax.f32 %v329_v12, 0.0 }
 0x1db   :  { %v346_v52 = vmax.f32 %v330_v48, 0.0  ;;  %v347_v30 = vmax.f32 %v331_v14, 0.0  ;;  %v348_v53 = vmax.f32 %v332_v49, 0.0  ;;  %v349_v33 = vmax.f32 %v333_v16, 0.0  ;;  %v130_v62 = vpop.permute.xlu1 %129 }
 0x1dc   :  { %358 = vst.msk [vmem:[%s1179_s6] sm:$0xff] %vm134_vm2, %v342_v18  ;;  %359 = vst.msk [vmem:[%s1179_s6 + $0x8] sm:$0xff] %vm134_vm2, %v343_v23  ;;  %v334_v54 = vadd.f32 %v323_v50, %v281_v44  ;;  %v335_v55 = vadd.f32 %v323_v50, %v282_v45  ;;  %v336_v56 = vadd.f32 %v323_v50, %v283_v6 }
 0x1dd   :  { %360 = vst.msk [vmem:[%s1179_s6 + $0x10] sm:$0xff] %vm134_vm2, %v344_v51  ;;  %361 = vst.msk [vmem:[%s1179_s6 + $0x18] sm:$0xff] %vm134_vm2, %v345_v25  ;;  %v337_v57 = vadd.f32 %v323_v50, %v284_v9  ;;  %v338_v58 = vadd.f32 %v323_v50, %v285_v11  ;;  %v339_v59 = vadd.f32 %v323_v50, %v286_v13 }
 0x1de   :  { %362 = vst.msk [vmem:[%s1179_s6 + $0x20] sm:$0xff] %vm134_vm2, %v346_v52  ;;  %363 = vst.msk [vmem:[%s1179_s6 + $0x28] sm:$0xff] %vm134_vm2, %v347_v30  ;;  %v340_v60 = vadd.f32 %v323_v50, %v287_v15  ;;  %v341_v61 = vadd.f32 %v323_v50, %v288_v17  ;;  %v350_v63 = vmax.f32 %v334_v54, 0.0  ;;  %v351_v0 = vmax.f32 %v335_v55, 0.0 }
 0x1df   :  { %364 = vst.msk [vmem:[%s1179_s6 + $0x30] sm:$0xff] %vm134_vm2, %v348_v53  ;;  %365 = vst.msk [vmem:[%s1179_s6 + $0x38] sm:$0xff] %vm134_vm2, %v349_v33  ;;  %v352_v1 = vmax.f32 %v336_v56, 0.0  ;;  %v353_v2 = vmax.f32 %v337_v57, 0.0  ;;  %v354_v3 = vmax.f32 %v338_v58, 0.0  ;;  %v355_v4 = vmax.f32 %v339_v59, 0.0 }
 0x1e0   :  { %133 = vst.msk [vmem:[#allocation4] sm:$0x3] %vm132_vm5, %v130_v62  ;;  %v356_v5 = vmax.f32 %v340_v60, 0.0  ;;  %v357_v8 = vmax.f32 %v341_v61, 0.0 }
 0x1e1   :  { %754 = shalt.err (!%p751_p12)
}
 0x1e2   :  { %s755_s27 = scalar_lea.hbm %s1181_s8, 32 }
 0x1e3   :  { %p756_p13 = scmp.ne.s32.totalorder %s1181_s8, %s755_s27  ;;  %p759_p0 = scmp.lt.u32.totalorder %s755_s27, %s1181_s8 }
 0x1e5   :  { %p761_p1 = pnand %p759_p0, %p756_p13 }
 0x1e7   :  { %764 = shalt.err (!%p761_p1)
}
 0x1e8   :  { %619 = dma.vmem_to_hbm [thread:$0]  %s1105_s4, 32, %s1181_s8, [#allocation5]   ;;  %366 = vst.msk [vmem:[%s1179_s6 + $0x40] sm:$0xff] %vm134_vm2, %v350_v63  ;;  %367 = vst.msk [vmem:[%s1179_s6 + $0x48] sm:$0xff] %vm134_vm2, %v351_v0 }
 0x1e9   :  { %368 = vst.msk [vmem:[%s1179_s6 + $0x50] sm:$0xff] %vm134_vm2, %v352_v1  ;;  %369 = vst.msk [vmem:[%s1179_s6 + $0x58] sm:$0xff] %vm134_vm2, %v353_v2 }
 0x1ea   :  { %370 = vst.msk [vmem:[%s1179_s6 + $0x60] sm:$0xff] %vm134_vm2, %v354_v3  ;;  %371 = vst.msk [vmem:[%s1179_s6 + $0x68] sm:$0xff] %vm134_vm2, %v355_v4 }
 0x1eb   :  { %372 = vst.msk [vmem:[%s1179_s6 + $0x70] sm:$0xff] %vm134_vm2, %v356_v5  ;;  %373 = vst.msk [vmem:[%s1179_s6 + $0x78] sm:$0xff] %vm134_vm2, %v357_v8 }
 0x1ec   :  { %765 = dma.done.wait [#allocation3], 2048  }
 0x1ed   :  { %766 = vsyncadd [#allocation3], 4294965248 }
 0x1ee   :  { %767 = dma.done.wait [#allocation5], 32  }
 0x1ef   :  { %768 = vsyncadd [#allocation5], 4294967264 }
 0x1f0   :  { %628 = vsyncpa [#allocation3], 1 }
 0x1f1   :  { %629 = vsyncpa [#allocation5], 1 }

</bundles_post_ra>
